<compile_context>
chip_gen: v6e
topology: v6e:2x2x1
jax: 0.10.0
libtpu: 0.0.40
codegen_flags: <defaults>
</compile_context>

<pallas_src>
import functools

import jax
import jax.numpy as jnp
from jax.experimental import pallas as pl
from jax.experimental.pallas import tpu as pltpu


def gin_kernel(eps_ref, x_all_ref, x_tile_ref, idx_ref, w_ref, b_ref, o_ref, *, K):
    """One (batch, row-tile) block of the GIN layer, channels-major.

    eps_ref:    (1,)           SMEM scalar epsilon
    x_all_ref:  (1, Cin, N)    full per-batch node features (gather source)
    x_tile_ref: (1, Cin, tN)   node features of this row tile (self term)
    idx_ref:    (1, K, tN)     int32 neighbor indices, values in [0, N)
    w_ref:      (Cout, Cin)    1x1-conv weight
    b_ref:      (Cout, 1)      bias
    o_ref:      (1, Cout, tN)  output block (node dim on the lane axis)
    """
    x_all = x_all_ref[0]                       # [Cin, N]
    x_tile = x_tile_ref[0]                     # [Cin, tN]
    idx = idx_ref[0]                           # [K, tN]
    N = x_all.shape[1]
    tN = x_tile.shape[1]
    eps = eps_ref[0]

    # Iota over the SOURCE dimension only: src_iota[j, i] = j (no N x N temp).
    src_iota = jax.lax.broadcasted_iota(jnp.int32, (N, tN), 0)

    def gather_k(kk):
        # sel[j, i] = 1 iff idx[kk, i] == j   (exact selection matrix, x.dtype)
        sel = (idx[kk:kk + 1, :] == src_iota).astype(x_all.dtype)       # [N, tN]
        return jnp.dot(x_all, sel, preferred_element_type=jnp.float32)  # [Cin, tN]

    agg = gather_k(0)
    for kk in range(1, K):                     # K static & small -> unrolled
        agg = jnp.maximum(agg, gather_k(kk))

    h = (1.0 + eps) * x_tile.astype(jnp.float32) + agg                   # [Cin, tN]
    y = jnp.dot(w_ref[...].astype(jnp.float32), h,
                preferred_element_type=jnp.float32)                      # [Cout, tN]
    y = y + b_ref[...].astype(jnp.float32)                               # bias bcast over lanes
    o_ref[0] = jnp.maximum(y, 0.0).astype(o_ref.dtype)                   # ReLU


def _pick_tile_n(N, Cin, K, Cout, itemsize):
    """Largest row tile (multiple of 128 dividing N) whose working set fits a
    conservative per-core VMEM budget (sized for v7x's 64 MiB physical)."""
    if N <= 256:
        return N
    budget = 24 * 1024 * 1024
    for t in (1024, 512, 256, 128):
        if N % t:
            continue
        need = (2 * itemsize * (Cin * N + Cin * t)     # double-buffered x blocks
                + 2 * 4 * K * t                        # double-buffered idx block
                + 2 * itemsize * Cout * t              # double-buffered out block
                + 2 * 4 * N * t)                       # live one-hot / f32 temps
        if need <= budget:
            return t
    return N                                           # N not 128-divisible: no tiling


def gin_conv2d_forward(x_nchw, edge_index, weight, bias, eps=0.0, *, tile_n=None):
    """x_nchw: [B, Cin, N, 1], edge_index: [2, B, N, K] (int),
    weight: [Cout, Cin, 1, 1], bias: [Cout]. Returns [B, Cout, N, 1]."""
    B, Cin, N, W1 = x_nchw.shape
    assert W1 == 1, "expected NCHW with W == 1 (dense graph layout)"
    Cout = weight.shape[0]
    K = edge_index.shape[-1]

    # Channels-major: no float transposes on the input or output.
    x_bcn = x_nchw[..., 0]                                    # [B, Cin, N]
    # Indices [B, N, K] -> [B, K, N]: a neighbor slot becomes a sublane row.
    # OOB indices would silently gather 0.0; clamp to the valid range instead.
    idx_bkn = jnp.clip(edge_index[0].astype(jnp.int32), 0, N - 1)
    idx_bkn = jnp.transpose(idx_bkn, (0, 2, 1))               # [B, K, N]
    w2d = weight.reshape(Cout, Cin)                           # [Cout, Cin]
    b2d = bias.reshape(Cout, 1)                               # [Cout, 1]
    eps_arr = jnp.asarray([eps], dtype=jnp.float32)           # SMEM scalar

    itemsize = jnp.dtype(x_bcn.dtype).itemsize
    tN = tile_n if tile_n is not None else _pick_tile_n(N, Cin, K, Cout, itemsize)
    assert N % tN == 0, (N, tN)
    n_tiles = N // tN

    kernel = functools.partial(gin_kernel, K=int(K))

    # Advisory scheduling hints.
    flops = 2 * B * N * (K * N * Cin + Cin * Cout)
    bytes_accessed = (B * n_tiles * itemsize * Cin * N          # resident x, re-read per tile
                      + B * itemsize * Cin * N                  # x row tiles
                      + B * 4 * K * N                           # indices
                      + B * itemsize * Cout * N                 # output
                      + 4 * (Cout * Cin + Cout))                # weight + bias
    vmem_need = (2 * itemsize * (Cin * N + Cin * tN)
                 + 2 * 4 * K * tN + 2 * itemsize * Cout * tN
                 + 2 * 4 * N * tN + 4 * (Cin + Cout) * tN)
    vmem_limit = int(min(max(vmem_need, 32 * 1024 * 1024), 64 * 1024 * 1024))

    out_bcn = pl.pallas_call(
        kernel,
        out_shape=jax.ShapeDtypeStruct((B, Cout, N), x_bcn.dtype),
        grid=(B, n_tiles),
        in_specs=[
            pl.BlockSpec(memory_space=pltpu.MemorySpace.SMEM),         # eps scalar
            pl.BlockSpec((1, Cin, N), lambda b, j: (b, 0, 0)),         # x (gather source)
            pl.BlockSpec((1, Cin, tN), lambda b, j: (b, 0, j)),        # x row tile
            pl.BlockSpec((1, K, tN), lambda b, j: (b, 0, j)),          # neighbor idx tile
            pl.BlockSpec((Cout, Cin), lambda b, j: (0, 0)),            # weight
            pl.BlockSpec((Cout, 1), lambda b, j: (0, 0)),              # bias
        ],
        out_specs=pl.BlockSpec((1, Cout, tN), lambda b, j: (b, 0, j)),
        compiler_params=pltpu.CompilerParams(
            dimension_semantics=("parallel", "parallel"),
            vmem_limit_bytes=vmem_limit),
        cost_estimate=pl.CostEstimate(flops=int(flops), transcendentals=0,
                                      bytes_accessed=int(bytes_accessed)),
    )(eps_arr, x_bcn, x_bcn, idx_bkn, w2d, b2d)

    return out_bcn[..., None]                                   # [B, Cout, N, 1]


def ref_forward(x_nchw, edge_index, weight, bias, eps=0.0):
    """Plain-JAX reference (mirrors the PyTorch forward with aggr='max')."""
    B, Cin, N, _ = x_nchw.shape
    Cout = weight.shape[0]
    idx = edge_index[0]                                    # [B, N, K]
    x_bnc = jnp.transpose(x_nchw[..., 0], (0, 2, 1))       # [B, N, Cin]
    x_j = jax.vmap(lambda xb, ib: xb[ib])(x_bnc, idx)      # [B, N, K, Cin]
    agg = jnp.max(x_j, axis=2)                             # [B, N, Cin]
    h = (1.0 + eps) * x_bnc + agg
    w2d = weight.reshape(Cout, Cin)
    y = jnp.einsum("bnc,oc->bno", h, w2d,
                   precision=jax.lax.Precision.HIGHEST) + bias[None, None, :]
    y = jnp.maximum(y, 0.0)
    return jnp.transpose(y, (0, 2, 1))[..., None]


if __name__ == "__main__":
    def run_case(case, B, Cin, Cout, N, K, eps, tile_n=None):
        key = jax.random.fold_in(jax.random.PRNGKey(0), case)
        kx, kidx, kw, kb = jax.random.split(key, 4)
        x = jax.random.normal(kx, (B, Cin, N, 1), dtype=jnp.float32)   # NCHW
        edge_index = jax.random.randint(kidx, (2, B, N, K), 0, N, dtype=jnp.int32)
        # Conv2d(in_channels, out_channels, kernel_size=1, bias=True) params
        weight = (jax.random.normal(kw, (Cout, Cin, 1, 1), dtype=jnp.float32)
                  * (1.0 / jnp.sqrt(Cin)))
        bias = jax.random.normal(kb, (Cout,), dtype=jnp.float32) * 0.1

        out = jax.block_until_ready(
            gin_conv2d_forward(x, edge_index, weight, bias, eps, tile_n=tile_n))
        ref = ref_forward(x, edge_index, weight, bias, eps)
        assert out.shape == (B, Cout, N, 1), out.shape
        err = float(jnp.max(jnp.abs(out - ref)))
        assert err < 2e-3, err

    # Small shapes matching the module defaults (k=9, 1x1-conv MLP, eps=0).
    run_case(0, B=2, Cin=4, Cout=8, N=16, K=9, eps=0.0)
    # Multi-tile path: grid = (B, N // 128), lane-dense channels-major stores.
    run_case(1, B=2, Cin=8, Cout=16, N=256, K=9, eps=0.25, tile_n=128)
    print("KERNEL_OK")
</pallas_src>

<mosaic_0001>
module attributes {stable_mosaic.version = 11 : i64} {
  func.func @gin_kernel(%arg0: i32, %arg1: i32, %arg2: memref<1xf32, #tpu.memory_space<smem>>, %arg3: memref<1x4x16xf32, #tpu.memory_space<vmem>>, %arg4: memref<1x4x16xf32, #tpu.memory_space<vmem>>, %arg5: memref<1x9x16xi32, #tpu.memory_space<vmem>>, %arg6: memref<8x4xf32, #tpu.memory_space<vmem>>, %arg7: memref<8x1xf32, #tpu.memory_space<vmem>>, %arg8: memref<1x8x16xf32, #tpu.memory_space<vmem>>) attributes {dimension_semantics = [#tpu.dimension_semantics<parallel>, #tpu.dimension_semantics<parallel>], iteration_bounds = array<i64: 2, 1>, scalar_prefetch = 0 : i64, scratch_operands = 0 : i64, tpu.core_type = #tpu.core_type<tc>, window_params = [{transform_indices = @transform_0, window_bounds = array<i64: 1>}, {transform_indices = @transform_1, window_bounds = array<i64: 1, 4, 16>}, {transform_indices = @transform_2, window_bounds = array<i64: 1, 4, 16>}, {transform_indices = @transform_3, window_bounds = array<i64: 1, 9, 16>}, {pipeline_mode = #tpu.pipeline_mode<synchronous>, transform_indices = @transform_4, window_bounds = array<i64: 8, 4>}, {pipeline_mode = #tpu.pipeline_mode<synchronous>, transform_indices = @transform_5, window_bounds = array<i64: 8, 1>}, {transform_indices = @transform_6, window_bounds = array<i64: 1, 8, 16>}]} {
    %c0 = arith.constant 0 : index
    %c0_0 = arith.constant 0 : index
    %c0_1 = arith.constant 0 : index
    %0 = vector.load %arg3[%c0, %c0_0, %c0_1] : memref<1x4x16xf32, #tpu.memory_space<vmem>>, vector<1x4x16xf32>
    %1 = vector.shape_cast %0 : vector<1x4x16xf32> to vector<4x16xf32>
    %c0_2 = arith.constant 0 : index
    %c0_3 = arith.constant 0 : index
    %c0_4 = arith.constant 0 : index
    %2 = vector.load %arg4[%c0_2, %c0_3, %c0_4] : memref<1x4x16xf32, #tpu.memory_space<vmem>>, vector<1x4x16xf32>
    %3 = vector.shape_cast %2 : vector<1x4x16xf32> to vector<4x16xf32>
    %c0_5 = arith.constant 0 : index
    %c0_6 = arith.constant 0 : index
    %c0_7 = arith.constant 0 : index
    %4 = vector.load %arg5[%c0_5, %c0_6, %c0_7] : memref<1x9x16xi32, #tpu.memory_space<vmem>>, vector<1x9x16xi32>
    %5 = vector.shape_cast %4 : vector<1x9x16xi32> to vector<9x16xi32>
    %c0_8 = arith.constant 0 : index
    %6 = memref.load %arg2[%c0_8] : memref<1xf32, #tpu.memory_space<smem>>
    %7 = tpu.iota {dimensions = array<i32: 0>} : vector<16x16xi32>
    %8 = vector.extract_strided_slice %5 {offsets = [0, 0], sizes = [1, 16], strides = [1, 1]} : vector<9x16xi32> to vector<1x16xi32>
    %9 = vector.broadcast %8 : vector<1x16xi32> to vector<16x16xi32>
    %10 = arith.cmpi eq, %9, %7 : vector<16x16xi32>
    %11 = arith.extui %10 : vector<16x16xi1> to vector<16x16xi32>
    %12 = arith.sitofp %11 : vector<16x16xi32> to vector<16x16xf32>
    %cst = arith.constant dense<0.000000e+00> : vector<4x16xf32>
    %13 = tpu.matmul %1, %12, %cst {dimension_numbers = #tpu.dot_dimension_numbers<[1], [0], [0], [1], [0, 0, 1, 1], [], []>} : vector<4x16xf32>, vector<16x16xf32>, vector<4x16xf32> -> vector<4x16xf32>
    %14 = vector.extract_strided_slice %5 {offsets = [1, 0], sizes = [1, 16], strides = [1, 1]} : vector<9x16xi32> to vector<1x16xi32>
    %15 = vector.broadcast %14 : vector<1x16xi32> to vector<16x16xi32>
    %16 = arith.cmpi eq, %15, %7 : vector<16x16xi32>
    %17 = arith.extui %16 : vector<16x16xi1> to vector<16x16xi32>
    %18 = arith.sitofp %17 : vector<16x16xi32> to vector<16x16xf32>
    %cst_9 = arith.constant dense<0.000000e+00> : vector<4x16xf32>
    %19 = tpu.matmul %1, %18, %cst_9 {dimension_numbers = #tpu.dot_dimension_numbers<[1], [0], [0], [1], [0, 0, 1, 1], [], []>} : vector<4x16xf32>, vector<16x16xf32>, vector<4x16xf32> -> vector<4x16xf32>
    %20 = arith.maximumf %13, %19 : vector<4x16xf32>
    %21 = vector.extract_strided_slice %5 {offsets = [2, 0], sizes = [1, 16], strides = [1, 1]} : vector<9x16xi32> to vector<1x16xi32>
    %22 = vector.broadcast %21 : vector<1x16xi32> to vector<16x16xi32>
    %23 = arith.cmpi eq, %22, %7 : vector<16x16xi32>
    %24 = arith.extui %23 : vector<16x16xi1> to vector<16x16xi32>
    %25 = arith.sitofp %24 : vector<16x16xi32> to vector<16x16xf32>
    %cst_10 = arith.constant dense<0.000000e+00> : vector<4x16xf32>
    %26 = tpu.matmul %1, %25, %cst_10 {dimension_numbers = #tpu.dot_dimension_numbers<[1], [0], [0], [1], [0, 0, 1, 1], [], []>} : vector<4x16xf32>, vector<16x16xf32>, vector<4x16xf32> -> vector<4x16xf32>
    %27 = arith.maximumf %20, %26 : vector<4x16xf32>
    %28 = vector.extract_strided_slice %5 {offsets = [3, 0], sizes = [1, 16], strides = [1, 1]} : vector<9x16xi32> to vector<1x16xi32>
    %29 = vector.broadcast %28 : vector<1x16xi32> to vector<16x16xi32>
    %30 = arith.cmpi eq, %29, %7 : vector<16x16xi32>
    %31 = arith.extui %30 : vector<16x16xi1> to vector<16x16xi32>
    %32 = arith.sitofp %31 : vector<16x16xi32> to vector<16x16xf32>
    %cst_11 = arith.constant dense<0.000000e+00> : vector<4x16xf32>
    %33 = tpu.matmul %1, %32, %cst_11 {dimension_numbers = #tpu.dot_dimension_numbers<[1], [0], [0], [1], [0, 0, 1, 1], [], []>} : vector<4x16xf32>, vector<16x16xf32>, vector<4x16xf32> -> vector<4x16xf32>
    %34 = arith.maximumf %27, %33 : vector<4x16xf32>
    %35 = vector.extract_strided_slice %5 {offsets = [4, 0], sizes = [1, 16], strides = [1, 1]} : vector<9x16xi32> to vector<1x16xi32>
    %36 = vector.broadcast %35 : vector<1x16xi32> to vector<16x16xi32>
    %37 = arith.cmpi eq, %36, %7 : vector<16x16xi32>
    %38 = arith.extui %37 : vector<16x16xi1> to vector<16x16xi32>
    %39 = arith.sitofp %38 : vector<16x16xi32> to vector<16x16xf32>
    %cst_12 = arith.constant dense<0.000000e+00> : vector<4x16xf32>
    %40 = tpu.matmul %1, %39, %cst_12 {dimension_numbers = #tpu.dot_dimension_numbers<[1], [0], [0], [1], [0, 0, 1, 1], [], []>} : vector<4x16xf32>, vector<16x16xf32>, vector<4x16xf32> -> vector<4x16xf32>
    %41 = arith.maximumf %34, %40 : vector<4x16xf32>
    %42 = vector.extract_strided_slice %5 {offsets = [5, 0], sizes = [1, 16], strides = [1, 1]} : vector<9x16xi32> to vector<1x16xi32>
    %43 = vector.broadcast %42 : vector<1x16xi32> to vector<16x16xi32>
    %44 = arith.cmpi eq, %43, %7 : vector<16x16xi32>
    %45 = arith.extui %44 : vector<16x16xi1> to vector<16x16xi32>
    %46 = arith.sitofp %45 : vector<16x16xi32> to vector<16x16xf32>
    %cst_13 = arith.constant dense<0.000000e+00> : vector<4x16xf32>
    %47 = tpu.matmul %1, %46, %cst_13 {dimension_numbers = #tpu.dot_dimension_numbers<[1], [0], [0], [1], [0, 0, 1, 1], [], []>} : vector<4x16xf32>, vector<16x16xf32>, vector<4x16xf32> -> vector<4x16xf32>
    %48 = arith.maximumf %41, %47 : vector<4x16xf32>
    %49 = vector.extract_strided_slice %5 {offsets = [6, 0], sizes = [1, 16], strides = [1, 1]} : vector<9x16xi32> to vector<1x16xi32>
    %50 = vector.broadcast %49 : vector<1x16xi32> to vector<16x16xi32>
    %51 = arith.cmpi eq, %50, %7 : vector<16x16xi32>
    %52 = arith.extui %51 : vector<16x16xi1> to vector<16x16xi32>
    %53 = arith.sitofp %52 : vector<16x16xi32> to vector<16x16xf32>
    %cst_14 = arith.constant dense<0.000000e+00> : vector<4x16xf32>
    %54 = tpu.matmul %1, %53, %cst_14 {dimension_numbers = #tpu.dot_dimension_numbers<[1], [0], [0], [1], [0, 0, 1, 1], [], []>} : vector<4x16xf32>, vector<16x16xf32>, vector<4x16xf32> -> vector<4x16xf32>
    %55 = arith.maximumf %48, %54 : vector<4x16xf32>
    %56 = vector.extract_strided_slice %5 {offsets = [7, 0], sizes = [1, 16], strides = [1, 1]} : vector<9x16xi32> to vector<1x16xi32>
    %57 = vector.broadcast %56 : vector<1x16xi32> to vector<16x16xi32>
    %58 = arith.cmpi eq, %57, %7 : vector<16x16xi32>
    %59 = arith.extui %58 : vector<16x16xi1> to vector<16x16xi32>
    %60 = arith.sitofp %59 : vector<16x16xi32> to vector<16x16xf32>
    %cst_15 = arith.constant dense<0.000000e+00> : vector<4x16xf32>
    %61 = tpu.matmul %1, %60, %cst_15 {dimension_numbers = #tpu.dot_dimension_numbers<[1], [0], [0], [1], [0, 0, 1, 1], [], []>} : vector<4x16xf32>, vector<16x16xf32>, vector<4x16xf32> -> vector<4x16xf32>
    %62 = arith.maximumf %55, %61 : vector<4x16xf32>
    %63 = vector.extract_strided_slice %5 {offsets = [8, 0], sizes = [1, 16], strides = [1, 1]} : vector<9x16xi32> to vector<1x16xi32>
    %64 = vector.broadcast %63 : vector<1x16xi32> to vector<16x16xi32>
    %65 = arith.cmpi eq, %64, %7 : vector<16x16xi32>
    %66 = arith.extui %65 : vector<16x16xi1> to vector<16x16xi32>
    %67 = arith.sitofp %66 : vector<16x16xi32> to vector<16x16xf32>
    %cst_16 = arith.constant dense<0.000000e+00> : vector<4x16xf32>
    %68 = tpu.matmul %1, %67, %cst_16 {dimension_numbers = #tpu.dot_dimension_numbers<[1], [0], [0], [1], [0, 0, 1, 1], [], []>} : vector<4x16xf32>, vector<16x16xf32>, vector<4x16xf32> -> vector<4x16xf32>
    %69 = arith.maximumf %62, %68 : vector<4x16xf32>
    %cst_17 = arith.constant 1.000000e+00 : f32
    %70 = arith.addf %cst_17, %6 : f32
    %71 = vector.broadcast %70 : f32 to vector<4x16xf32>
    %72 = arith.mulf %71, %3 : vector<4x16xf32>
    %73 = arith.addf %72, %69 : vector<4x16xf32>
    %c0_18 = arith.constant 0 : index
    %c0_19 = arith.constant 0 : index
    %74 = vector.load %arg6[%c0_18, %c0_19] : memref<8x4xf32, #tpu.memory_space<vmem>>, vector<8x4xf32>
    %cst_20 = arith.constant dense<0.000000e+00> : vector<8x16xf32>
    %75 = tpu.matmul %74, %73, %cst_20 {dimension_numbers = #tpu.dot_dimension_numbers<[1], [0], [0], [1], [0, 0, 1, 1], [], []>} : vector<8x4xf32>, vector<4x16xf32>, vector<8x16xf32> -> vector<8x16xf32>
    %c0_21 = arith.constant 0 : index
    %c0_22 = arith.constant 0 : index
    %76 = vector.load %arg7[%c0_21, %c0_22] : memref<8x1xf32, #tpu.memory_space<vmem>>, vector<8x1xf32>
    %77 = vector.broadcast %76 : vector<8x1xf32> to vector<8x16xf32>
    %78 = arith.addf %75, %77 : vector<8x16xf32>
    %cst_23 = arith.constant 0.000000e+00 : f32
    %79 = vector.broadcast %cst_23 : f32 to vector<8x16xf32>
    %80 = arith.maximumf %78, %79 : vector<8x16xf32>
    %c0_24 = arith.constant 0 : index
    %c0_25 = arith.constant 0 : index
    %c0_26 = arith.constant 0 : index
    %81 = vector.load %arg8[%c0_24, %c0_25, %c0_26] : memref<1x8x16xf32, #tpu.memory_space<vmem>>, vector<1x8x16xf32>
    %82 = vector.shape_cast %81 : vector<1x8x16xf32> to vector<8x16xf32>
    %83 = vector.shape_cast %80 : vector<8x16xf32> to vector<1x8x16xf32>
    tpu.vector_store %arg8[%c0_24, %c0_25, %c0_26], %83 {strides = array<i32>} : memref<1x8x16xf32, #tpu.memory_space<vmem>>, vector<1x8x16xf32>,
    return
  }
  func.func @transform_0(%arg0: i32, %arg1: i32) -> i32 {
    %c0_i32 = arith.constant 0 : i32
    %c0_i32_0 = arith.constant 0 : i32
    return %c0_i32 : i32
  }
  func.func @transform_1(%arg0: i32, %arg1: i32) -> (i32, i32, i32) {
    %c0_i32 = arith.constant 0 : i32
    %c0_i32_0 = arith.constant 0 : i32
    %c0_i32_1 = arith.constant 0 : i32
    return %arg0, %c0_i32, %c0_i32_0 : i32, i32, i32
  }
  func.func @transform_2(%arg0: i32, %arg1: i32) -> (i32, i32, i32) {
    %c0_i32 = arith.constant 0 : i32
    %c0_i32_0 = arith.constant 0 : i32
    return %arg0, %c0_i32, %arg1 : i32, i32, i32
  }
  func.func @transform_3(%arg0: i32, %arg1: i32) -> (i32, i32, i32) {
    %c0_i32 = arith.constant 0 : i32
    %c0_i32_0 = arith.constant 0 : i32
    return %arg0, %c0_i32, %arg1 : i32, i32, i32
  }
  func.func @transform_4(%arg0: i32, %arg1: i32) -> (i32, i32) {
    %c0_i32 = arith.constant 0 : i32
    %c0_i32_0 = arith.constant 0 : i32
    %c0_i32_1 = arith.constant 0 : i32
    return %c0_i32, %c0_i32_0 : i32, i32
  }
  func.func @transform_5(%arg0: i32, %arg1: i32) -> (i32, i32) {
    %c0_i32 = arith.constant 0 : i32
    %c0_i32_0 = arith.constant 0 : i32
    %c0_i32_1 = arith.constant 0 : i32
    return %c0_i32, %c0_i32_0 : i32, i32
  }
  func.func @transform_6(%arg0: i32, %arg1: i32) -> (i32, i32, i32) {
    %c0_i32 = arith.constant 0 : i32
    %c0_i32_0 = arith.constant 0 : i32
    return %arg0, %c0_i32, %arg1 : i32, i32, i32
  }
}

</mosaic_0001>

<bundles_post_ra>
// kernel: tpu_custom_call.1
= control target key start
LH: loop header
LB: loop body
LE: loop exit
PB: predicated region body
PF: predicated region fallthrough
CT: control target
= control target key end

     0   :  { %s1841_s0 = inlined_call_operand.<no memory space> [shape: f32[1], index: 0, kind: input, shape index: {}]   ;;  %s1842_s1 = inlined_call_operand.vmem [shape: f32[2,4,16], index: 1, kind: input, shape index: {}]   ;;  %s1843_s2 = inlined_call_operand.vmem [shape: f32[2,4,16], index: 2, kind: input, shape index: {}]   ;;  %s1844_s3 = inlined_call_operand.vmem [shape: s32[2,9,16], index: 3, kind: input, shape index: {}]   ;;  %s1845_s4 = inlined_call_operand.vmem [shape: f32[8,4], index: 4, kind: input, shape index: {}]   ;;  %s1846_s5 = inlined_call_operand.vmem [shape: f32[8,1], index: 5, kind: input, shape index: {}]   ;;  %s1847_s6 = inlined_call_operand.hbm [shape: f32[2,8,16], index: 6, kind: output, shape index: {}]  }
   0x1   :  { %11 = sst [smem:[#allocation2]] %s1841_s0 }
   0x2   :  { %12 = vsyncpa [#allocation4], 0 }
   0x3   :  { %14 = vsyncpa [#allocation4 + $0x1], 0  ;;  %s1609_s23 = smov 0   ;;  %s1611_s24 = smov 0  }
   0x4   :  { %s1613_s25 = smov 0   ;;  %s1615_s26 = smov 0  }
   0x5   :  { %s1617_s27 = smov 0   ;;  %s1619_s28 = smov 0  }
   0x6 LB: > { %s1268_s0 = sadd.s32 4294967295, %s1564_s28   ;;  %s1269_s29 = sadd.s32 4294967294, %s1564_s28   ;;  %s1564_s28 = sphi %s1619_s28, %s20_s28   ;;  %s1560_s27 = sphi %s1617_s27, %s1854_s27   ;;  %s1556_s26 = sphi %s1615_s26, %s1853_s26   ;;  %s1552_s25 = sphi %s1613_s25, %s1852_s25   ;;  %s1548_s24 = sphi %s1611_s24, %s1851_s24   ;;  %s1544_s23 = sphi %s1609_s23, %s1850_s23  }
   0x7   : > { %s32_s30 = sadd.s32 1, %s1560_s27  ;;  %s186_s7 = sadd.s32 1, %s1552_s25 }
   0x8   : > { %p34_p0 = scmp.ge.s32.totalorder %s32_s30, 2  ;;  %p196_p1 = scmp.ne.s32.totalorder %s1552_s25, %s1548_s24 }
   0x9   : > { %p197_p2 = scmp.eq.s32.totalorder %s1268_s0, 1  ;;  %p202_p3 = scmp.ne.s32.totalorder %s1548_s24, %s1544_s23 }
   0xa   : > { %s1856_s30 = smov (%p34_p0, %s32_s30), 0  ;;  %p203_p5 = scmp.eq.s32.totalorder %s1269_s29, 1 }
   0xb   : > { %p1649_p4 = por %p197_p2, %p196_p1  ;;  %s181_s9 = ssub.s32 %s1560_s27, %s1856_s30 }
   0xc   : > { %p1272_p6 = scmp.ge.s32.totalorder %s1564_s28, 1  ;;  %p184_p7 = scmp.eq.s32.totalorder %s181_s9, 0 }
   0xd   : > { %p1656_p8 = por %p203_p5, %p202_p3  ;;  %p258_p9 = scmp.lt.s32.totalorder %s1564_s28, 3 }
   0xe   : > { %s1662_s11 = scalar_select %p184_p7, %s1552_s25, %s186_s7  }
   0xf   : > { %p259_p10 = pnand %p1272_p6, %p258_p9 }
  0x10   : > { %p302_p11 = scmp.lt.s32.totalorder (!%p259_p10), %s1556_s26, 1  ;;  %s325_s0 = sld [smem:[#allocation2]] (!%p259_p10) }
  0x11   : > { %262 = sbr.rel (%p259_p10) target bundleno = 465 (0x1d1), region = 44  ;;  %s1570_s7 = smov (!%p259_p10), [#allocation3]  }
  0x16   : > { %v326_v0 = vlaneseq  ;;  %v1566_v1 = vmov 0.0   ;;  %s1668_s12 = scalar_select %p302_p11, %s1556_s26, 1  ;;  %vm1567_vm0 = vmmov 0   ;;  %v1568_v13 = vmov 1.0   ;;  %v1066_v24 = vld [vmem:[%s1846_s5] sm:$0xff] }
  0x17   : > { %1360 = vmatprep.subr.mxu0 %v1566_v1  ;;  %1367 = vmatprep.subr.mxu1 %v1566_v1  ;;  %vm339_vm5 = vcmask 130048   ;;  %v1569_v25 = vmov 0   ;;  %s1061_s29 = sadd.f32 1.0, %s325_s0  ;;  %v1065_v56 = vld [vmem:[%s1845_s4] sm:$0xff] }
  0x18   : > { %v1670_v2 = vshrl.u32 %v326_v0, 7  ;;  %1364 = vmatprep.mubr.msk.f32.mxu0 %vm1567_vm0, %v1566_v1  ;;  %1371 = vmatprep.mubr.msk.f32.mxu1 %vm1567_vm0, %v1566_v1  ;;  %s1330_s13 = sshll.u32 %s1668_s12, 4  ;;  %s1274_s14 = sshll.u32 %s1668_s12, 2 }
  0x19   : > { %s1684_s17 = scalar_lea.vmem %s1844_s3, %s1330_s13  ;;  %s305_s20 = scalar_lea.vmem %s1842_s1, %s1274_s14  ;;  %1487 = vset.pattern.permute.xlu0 %v1569_v25  ;;  %v1062_v47 = vstv %s1061_s29 }
  0x1a   : > { %v331_v3 = vsub.s32 0, %v1670_v2  ;;  %v415_v4 = vsub.s32 1, %v1670_v2  ;;  %v496_v5 = vsub.s32 2, %v1670_v2  ;;  %v1687_v6 = vadd.s32 8, %v1670_v2  ;;  %v323_v8 = vld [vmem:[%s1684_s17] sm:$0xff]  ;;  %1069 = vperm.xlu0 %1487, %v1066_v24   ;;  %s312_s13 = scalar_lea.vmem %s1843_s2, %s1274_s14  ;;  %s299_s14 = sand.u32 1, %s1548_s24  }
  0x1b   : > { %v577_v7 = vsub.s32 3, %v1670_v2  ;;  %v1702_v14 = vld [vmem:[%s305_s20] sm:$0xf]  ;;  %v658_v15 = vsub.s32 4, %v1670_v2  ;;  %v739_v16 = vsub.s32 5, %v1670_v2  ;;  %v820_v19 = vsub.s32 6, %v1670_v2 }
  0x1c   : > { %v332_v9 = vrot.slane %v323_v8, %v331_v3  ;;  %v416_v10 = vrot.slane %v323_v8, %v415_v4  ;;  %v497_v11 = vrot.slane %v323_v8, %v496_v5  ;;  %v901_v20 = vsub.s32 7, %v1670_v2  ;;  %v1318_v23 = vld [vmem:[%s1684_s17 + $0x8] ss:$0 sm:$0xff]  ;;  %v322_v46 = vld [vmem:[%s312_s13] sm:$0xf]  ;;  %s1273_s16 = sshll.u32 %s299_s14, 3 }
  0x1d   : > { %v578_v12 = vrot.slane %v323_v8, %v577_v7  ;;  %v659_v17 = vrot.slane %v323_v8, %v658_v15  ;;  %v740_v18 = vrot.slane %v323_v8, %v739_v16  ;;  %v821_v21 = vrot.slane %v323_v8, %v820_v19  ;;  %s1327_s17 = sshll.u32 %s1556_s26, 7  ;;  %s301_s18 = scalar_lea.vmem [#allocation3], %s1273_s16 }
  0x1e   : > { %vm334_vm1 = vcmp.eq.s32.totalorder %v332_v9, %v1687_v6  ;;  %vm418_vm2 = vcmp.eq.s32.totalorder %v416_v10, %v1687_v6  ;;  %vm333_vm3 = vcmp.eq.s32.totalorder %v332_v9, %v1670_v2  ;;  %vm417_vm4 = vcmp.eq.s32.totalorder %v416_v10, %v1670_v2  ;;  %s1167_s19 = sshll.u32 %s301_s18, 4  ;;  %s1165_s22 = scalar_lea.hbm %s1847_s6, %s1327_s17  ;;  %s1168_s19 = int_to_ptr.vmem [resolvable:$true] %s1167_s19 }
  0x1f   : > { %1361 = vmatpush3.msk.msra.mxu0 %vm334_vm1, %v1568_v13  ;;  %1368 = vmatpush3.msk.msra.mxu1 %vm418_vm2, %v1568_v13  ;;  %vm499_vm6 = vcmp.eq.s32.totalorder %v497_v11, %v1687_v6  ;;  %vm580_vm7 = vcmp.eq.s32.totalorder %v578_v12, %v1687_v6  ;;  %vm498_vm8 = vcmp.eq.s32.totalorder %v497_v11, %v1670_v2  ;;  %s1153_s0 = scalar_lea.sflag [#allocation4], %s299_s14  ;;  %s1488_s29 = scalar_lea.vmem %s1168_s19, 128 }
  0x20   : > { %1362 = vmatprep.subr.mxu0 %v1566_v1  ;;  %1369 = vmatprep.subr.mxu1 %v1566_v1  ;;  %vm579_vm9 = vcmp.eq.s32.totalorder %v578_v12, %v1670_v2  ;;  %vm661_vm10 = vcmp.eq.s32.totalorder %v659_v17, %v1687_v6  ;;  %vm742_vm11 = vcmp.eq.s32.totalorder %v740_v18, %v1687_v6  ;;  %p1489_p12 = scmp.ne.s32.totalorder %s1168_s19, %s1488_s29  ;;  %s1492_s26 = sshll.u32 %s1570_s7, 4  ;;  %s1493_s26 = int_to_ptr.vmem [resolvable:$false] %s1492_s26 }
  0x21   : > { %1363 = vmatpush3.msk.msra.mxu0 %vm333_vm3, %v1568_v13  ;;  %1370 = vmatpush3.msk.msra.mxu1 %vm417_vm4, %v1568_v13  ;;  %vm660_vm12 = vcmp.eq.s32.totalorder %v659_v17, %v1670_v2  ;;  %v902_v22 = vrot.slane %v323_v8, %v901_v20  ;;  %vm741_vm13 = vcmp.eq.s32.totalorder %v740_v18, %v1670_v2  ;;  %s1494_s9 = scalar_lea.vmem %s1493_s26, 256  ;;  %p1495_p1 = scmp.lt.s32.totalorder %s1168_s19, %s1493_s26 }
  0x22   : > { %1365 = vmatmul.mubr.msk.f32.vlgmr.msra.gmra.mxu0 %vm339_vm5, %v1702_v14  ;;  %1372 = vmatmul.mubr.msk.f32.vlgmr.msra.gmra.mxu1 %vm339_vm5, %v1702_v14  ;;  %vm823_vm14 = vcmp.eq.s32.totalorder %v821_v21, %v1687_v6  ;;  %vm822_vm1 = vcmp.eq.s32.totalorder %v821_v21, %v1670_v2  ;;  %vm985_vm3 = vcmp.eq.s32.totalorder %v1318_v23, %v1687_v6  ;;  %p1490_p13 = pnand %p1489_p12, %p1649_p4  ;;  %p1496_p2 = scmp.lt.s32.totalorder %s1494_s9, %s1488_s29 }
  0x23   : > { %1374 = vmatprep.subr.mxu0 %v1566_v1  ;;  %1381 = vmatprep.subr.mxu1 %v1566_v1  ;;  %vm904_vm15 = vcmp.eq.s32.totalorder %v902_v22, %v1687_v6  ;;  %vm903_vm2 = vcmp.eq.s32.totalorder %v902_v22, %v1670_v2  ;;  %vm984_vm4 = vcmp.eq.s32.totalorder %v1318_v23, %v1670_v2 }
  0x24   : > { %1375 = vmatpush3.msk.msra.mxu0 %vm499_vm6, %v1568_v13  ;;  %1382 = vmatpush3.msk.msra.mxu1 %vm580_vm7, %v1568_v13  ;;  %v1063_v51 = vmul.f32 %v1062_v47, %v322_v46  ;;  %vm1072_vm6 = vcmask 31744   ;;  %p1491_p0 = pneg %p1490_p13  ;;  %p1497_p3 = por %p1496_p2, %p1495_p1 }
  0x25   : > { %1376 = vmatprep.subr.mxu0 %v1566_v1  ;;  %1383 = vmatprep.subr.mxu1 %v1566_v1 }
  0x26   : > { %1377 = vmatpush3.msk.msra.mxu0 %vm498_vm8, %v1568_v13  ;;  %1378 = vmatprep.mubr.msk.f32.mxu0 %vm1567_vm0, %v1566_v1  ;;  %p1498_p5 = pnand %p1497_p3, %p1491_p0 }
  0x27   : > { %1384 = vmatpush3.msk.msra.mxu1 %vm579_vm9, %v1568_v13  ;;  %1385 = vmatprep.mubr.msk.f32.mxu1 %vm1567_vm0, %v1566_v1 }
  0x28   : > { %1379 = vmatmul.mubr.msk.f32.vlgmr.msra.gmra.mxu0 %vm339_vm5, %v1702_v14  ;;  %1386 = vmatmul.mubr.msk.f32.vlgmr.msra.gmra.mxu1 %vm339_vm5, %v1702_v14 }
  0x29   : > { %1388 = vmatprep.subr.mxu0 %v1566_v1  ;;  %1395 = vmatprep.subr.mxu1 %v1566_v1 }
  0x2a   : > { %1389 = vmatpush3.msk.msra.mxu0 %vm661_vm10, %v1568_v13  ;;  %1396 = vmatpush3.msk.msra.mxu1 %vm742_vm11, %v1568_v13 }
  0x2b   : > { %1390 = vmatprep.subr.mxu0 %v1566_v1  ;;  %1397 = vmatprep.subr.mxu1 %v1566_v1 }
  0x2c   : > { %1391 = vmatpush3.msk.msra.mxu0 %vm660_vm12, %v1568_v13  ;;  %1392 = vmatprep.mubr.msk.f32.mxu0 %vm1567_vm0, %v1566_v1 }
  0x2d   : > { %1398 = vmatpush3.msk.msra.mxu1 %vm741_vm13, %v1568_v13  ;;  %1399 = vmatprep.mubr.msk.f32.mxu1 %vm1567_vm0, %v1566_v1 }
  0x2e   : > { %1393 = vmatmul.mubr.msk.f32.vlgmr.msra.gmra.mxu0 %vm339_vm5, %v1702_v14  ;;  %1400 = vmatmul.mubr.msk.f32.vlgmr.msra.gmra.mxu1 %vm339_vm5, %v1702_v14 }
  0x2f   : > { %1402 = vmatprep.subr.mxu0 %v1566_v1  ;;  %1409 = vmatprep.subr.mxu1 %v1566_v1 }
  0x30   : > { %1403 = vmatpush3.msk.msra.mxu0 %vm823_vm14, %v1568_v13  ;;  %1410 = vmatpush3.msk.msra.mxu1 %vm904_vm15, %v1568_v13 }
  0x31   : > { %1404 = vmatprep.subr.mxu0 %v1566_v1  ;;  %1411 = vmatprep.subr.mxu1 %v1566_v1 }
  0x32   : > { %1405 = vmatpush3.msk.msra.mxu0 %vm822_vm1, %v1568_v13  ;;  %1406 = vmatprep.mubr.msk.f32.mxu0 %vm1567_vm0, %v1566_v1 }
  0x33   : > { %1412 = vmatpush3.msk.msra.mxu1 %vm903_vm2, %v1568_v13  ;;  %1413 = vmatprep.mubr.msk.f32.mxu1 %vm1567_vm0, %v1566_v1 }
  0x34   : > { %1407 = vmatmul.mubr.msk.f32.vlgmr.msra.gmra.mxu0 %vm339_vm5, %v1702_v14  ;;  %1414 = vmatmul.mubr.msk.f32.vlgmr.msra.gmra.mxu1 %vm339_vm5, %v1702_v14 }
  0x35   : > { %1416 = vmatprep.subr.mxu0 %v1566_v1  ;;  %1420 = vmatprep.mubr.msk.f32.mxu0 %vm1567_vm0, %v1566_v1 }
  0x36   : > { %1417 = vmatpush3.msk.msra.mxu0 %vm985_vm3, %v1568_v13  ;;  %1423 = vmatprep.subr.mxu1 %v1566_v1 }
  0x37   : > { %1418 = vmatprep.subr.mxu0 %v1566_v1  ;;  %1425 = vmatprep.mubr.msk.f32.mxu1 %vm1567_vm0, %v1566_v1  ;;  %vm1076_vm0 = vcmask 1043456  }
  0x38   : > { %1419 = vmatpush3.msk.msra.mxu0 %vm984_vm4, %v1568_v13 }
  0x39   : > { %1421 = vmatmul.mubr.msk.f32.vlgmr.msra.gmra.mxu0 %vm339_vm5, %v1702_v14 }
  0x95   : > { %v1070_v57 = vpop.permute.xlu0 %1069 }
  0xe2   : > { %v409_v26 = vpop.f32.mrf.mxu0  ;;  %v489_v27 = vpop.f32.mrf.mxu1 }
  0xe3   : > { %v493_v30 = vmax.f32 %v409_v26, %v489_v27 }
  0xe4   : > { %v1366_v28 = vpop.f32.mrf.mxu0  ;;  %v1373_v29 = vpop.f32.mrf.mxu1 }
  0xe8   : > { %v570_v31 = vpop.f32.mrf.mxu0  ;;  %v651_v32 = vpop.f32.mrf.mxu1 }
  0xe9   : > { %v574_v33 = vmax.f32 %v493_v30, %v570_v31 }
  0xea   : > { %v1380_v34 = vpop.f32.mrf.mxu0  ;;  %v1387_v35 = vpop.f32.mrf.mxu1 }
  0xeb   : > { %v655_v36 = vmax.f32 %v574_v33, %v651_v32 }
  0xee   : > { %v732_v37 = vpop.f32.mrf.mxu0  ;;  %v813_v38 = vpop.f32.mrf.mxu1 }
  0xef   : > { %v736_v39 = vmax.f32 %v655_v36, %v732_v37 }
  0xf0   : > { %v1394_v40 = vpop.f32.mrf.mxu0  ;;  %v1401_v41 = vpop.f32.mrf.mxu1 }
  0xf1   : > { %v817_v42 = vmax.f32 %v736_v39, %v813_v38 }
  0xf4   : > { %v894_v43 = vpop.f32.mrf.mxu0  ;;  %v975_v44 = vpop.f32.mrf.mxu1 }
  0xf5   : > { %v898_v45 = vmax.f32 %v817_v42, %v894_v43 }
  0xf6   : > { %v1408_v48 = vpop.f32.mrf.mxu0  ;;  %v1415_v49 = vpop.f32.mrf.mxu1 }
  0xf7   : > { %v979_v50 = vmax.f32 %v898_v45, %v975_v44 }
  0xf9   : > { %v1056_v52 = vpop.f32.mrf.mxu0 }
  0xfa   : > { %v1060_v53 = vmax.f32 %v979_v50, %v1056_v52 }
  0xfb   : > { %v1422_v54 = vpop.f32.mrf.mxu0 }
  0xfc   : > { %v1064_v55 = vadd.f32 %v1063_v51, %v1060_v53 }
  0xfe   : > { %1424 = vmatpush3.msk.msra.mxu1 %vm1076_vm0, %v1064_v55 }
  0xff   : > { %1426 = vmatmul.mubr.msk.f32.vlgmr.msra.gmra.mxu1 %vm1072_vm6, %v1065_v56 }
 0x1bf   : > { %v1146_v58 = vpop.f32.mrf.mxu1 }
 0x1c0   : > { %v1147_v59 = vadd.f32 %v1146_v58, %v1070_v57 }
 0x1c1   : > { %v1427_v60 = vpop.f32.mrf.mxu1 }
 0x1c2   : > { %v1150_v61 = vmax.f32 %v1147_v59, 0.0 }
 0x1c4   : > { %1151 = vst.msk [vmem:[%s301_s18] sm:$0xff] %vm339_vm5, %v1150_v61 }
 0x1c5   : > { %1501 = shalt.err (!%p1498_p5)
}
 0x1c6   : > { %s1502_s13 = scalar_lea.hbm %s1165_s22, 128  ;;  %s1506_s14 = scalar_lea.hbm %s1847_s6, 256 }
 0x1c7   : > { %p1503_p6 = scmp.ne.s32.totalorder %s1165_s22, %s1502_s13  ;;  %p1507_p10 = scmp.lt.s32.totalorder %s1165_s22, %s1847_s6 }
 0x1c8   : > { %p1508_p11 = scmp.lt.s32.totalorder %s1506_s14, %s1502_s13 }
 0x1c9   : > { %p1504_p7 = pnand %p1503_p6, %p1649_p4 }
 0x1ca   : > { %p1509_p12 = por %p1508_p11, %p1507_p10 }
 0x1cb   : > { %p1505_p9 = pneg %p1504_p7 }
 0x1cd   : > { %p1510_p13 = pnand %p1509_p12, %p1505_p9 }
 0x1cf   : > { %1513 = shalt.err (!%p1510_p13)
}
 0x1d0   : > { %1428 = dma.vmem_to_hbm [thread:$0]  (%p1649_p4), %s1168_s19, 128, %s1165_s22, %s1153_s0  }
 0x1d1 PF: > { %p1434_p0 = scmp.ge.s32.totalorder %s1564_s28, 2  ;;  %s1179_s18 = sand.u32 1, %s1544_s23  }
 0x1d2   : > { %s1180_s20 = scalar_lea.sflag [#allocation4], %s1179_s18 }
 0x1d3   : > { %p1431_p1 = pnand %p1434_p0, %p1656_p8 }
 0x1d5   : > { %p1432_p2 = pneg %p1431_p1 }
 0x1d7   : > { %1539 = dma.done.wait (%p1432_p2), %s1180_s20, 128  }
 0x1d8   : > { %1541 = vsyncadd (%p1432_p2), %s1180_s20, 4294967168  ;;  %s20_s28 = sadd.s32 1, %s1564_s28   ;;  %s1850_s23 = smov %s1548_s24 }
 0x1d9   : > { %p17_p3 = scmp.ge.s32.totalorder %s20_s28, 4   ;;  %s1851_s24 = smov %s1552_s25 }
 0x1da   : > { %s1852_s25 = smov %s1662_s11  ;;  %s1853_s26 = smov %s1560_s27 }
 0x1db   : > { %s1854_s27 = smov %s1856_s30  ;;  %19 = sbr.rel (!%p17_p3) target bundleno = 6 (0x6), region = 85 }
 0x1e0   :  { %1185 = vsyncpa [#allocation4], 1 }
 0x1e1   :  { %1187 = vsyncpa [#allocation4 + $0x1], 1 }

</bundles_post_ra>
